<compile_context>
chip_gen: v7x
topology: tpu7x:2x2x1
jax: 0.10.0
libtpu: 0.0.40
codegen_flags: <defaults>
</compile_context>

<pallas_src>
import functools

import jax
import jax.numpy as jnp
from jax.experimental import pallas as pl
from jax.experimental.pallas import tpu as pltpu


# ----------------------------------------------------------------------------
# Pallas kernel.  One grid step = one block of B images, layout (B, C, H*W),
# channels on sublanes, flattened space on lanes (lane-dense, 256 wide).
#   conv1(1x1)+BN+ReLU -> conv2(3x3,pad1)+BN+ReLU -> conv3(1x1)+BN
#   -> identity residual add -> ReLU
# ----------------------------------------------------------------------------
def _bottleneck_kernel(x_ref, w1_ref, b1_ref, w2_ref, b2_ref, w3_ref, b3_ref,
                       mask_ref, o_ref, *, B, W, HW, mxu_dtype):
    # Weights / biases are constant-resident across grid steps; load once.
    w1 = w1_ref[...]          # (Cpad, Cin)       BN1 scale pre-folded
    w2 = w2_ref[...]          # (Cpad, 9*Cpad)    BN2 scale pre-folded, taps stacked
    w3 = w3_ref[...]          # (Cout, Cpad)      BN3 scale pre-folded
    b1 = b1_ref[...]          # (Cpad, 1)  f32
    b2 = b2_ref[...]          # (Cpad, 1)  f32
    b3 = b3_ref[...]          # (Cout, 1)  f32

    for b in range(B):        # static unroll over the images packed per step
        xb = x_ref[b]                                               # (Cin, HW)

        # --- conv1: 1x1 conv == channel matmul ------------------------------
        h1 = jnp.dot(w1, xb, preferred_element_type=jnp.float32)    # (Cpad, HW)
        h1 = jnp.maximum(h1 + b1, 0.0)                              # BN1 + ReLU

        # --- conv2: 3x3, stride 1, pad 1 -------------------------------------
        # 9 spatial taps via XLU lane rolls; boundary handled by precomputed
        # f32 masks; taps stacked along sublanes -> single MXU matmul (K=72).
        taps = []
        for k in range(9):
            dy, dx = k // 3, k % 3
            shift = (dy - 1) * W + (dx - 1)
            t = h1 if shift == 0 else pltpu.roll(h1, shift=(-shift) % HW, axis=1)
            if k != 4:                       # centre tap needs no boundary mask
                t = t * mask_ref[k]
            taps.append(t)
        tap_stack = jnp.concatenate(taps, axis=0).astype(mxu_dtype)  # (9*Cpad, HW)
        h2 = jnp.dot(w2, tap_stack, preferred_element_type=jnp.float32)
        h2 = jnp.maximum(h2 + b2, 0.0)                               # BN2 + ReLU

        # --- conv3: 1x1 conv == channel matmul --------------------------------
        h3 = jnp.dot(w3, h2.astype(mxu_dtype),
                     preferred_element_type=jnp.float32)             # (Cout, HW)
        h3 = h3 + b3                                                  # BN3

        # --- identity residual + last ReLU, lane-dense store ------------------
        o_ref[b] = jnp.maximum(h3 + xb.astype(jnp.float32), 0.0).astype(o_ref.dtype)


# ----------------------------------------------------------------------------
# Wrapper: NCHW in / NCHW out (reshapes only, no transposes on activations).
# ----------------------------------------------------------------------------
def bottleneck_forward(x_nchw, params, *, compute_dtype=jnp.float32,
                       images_per_block=None):
    N, Cin, H, W = x_nchw.shape
    HW = H * W
    cmid = params["w1"].shape[0]
    Cout = params["w3"].shape[0]
    assert Cout == Cin, "identity residual requires Cout == Cin (downsample=None)"

    f32 = jnp.float32
    cpad = max(8, -(-cmid // 8) * 8)      # pad mid channels to the f32 sublane tile

    # ---- fold BN scales into conv weights; pad mid channels to cpad ---------
    w1 = (params["w1"] * params["s1"]).astype(f32)                     # (cmid, Cin)
    w2_k = (params["w2"].transpose(0, 1, 3, 2).reshape(9, cmid, cmid)
            * params["s2"][None]).astype(f32)                          # (9, co, ci)
    w3 = (params["w3"] * params["s3"]).astype(f32)                     # (Cout, cmid)

    w1p = jnp.zeros((cpad, Cin), f32).at[:cmid].set(w1)
    b1p = jnp.zeros((cpad, 1), f32).at[:cmid].set(params["b1"].astype(f32))
    w2p = jnp.zeros((9, cpad, cpad), f32).at[:, :cmid, :cmid].set(w2_k)
    b2p = jnp.zeros((cpad, 1), f32).at[:cmid].set(params["b2"].astype(f32))
    # stacked conv2 weight: w2s[o, k*cpad + c] = w2p[k, o, c]
    w2s = w2p.transpose(1, 0, 2).reshape(cpad, 9 * cpad)
    w3p = jnp.zeros((Cout, cpad), f32).at[:, :cmid].set(w3)
    b3 = params["b3"].astype(f32)

    # ---- precomputed 3x3 boundary masks (per-image spatial index) ------------
    hw = jnp.arange(HW, dtype=jnp.int32)
    row = hw // W
    col = hw % W
    row_ok = [row >= 1, jnp.ones((HW,), dtype=bool), row <= H - 2]
    col_ok = [col >= 1, jnp.ones((HW,), dtype=bool), col <= W - 2]
    masks = jnp.stack([(row_ok[dy] & col_ok[dx]).astype(f32)
                       for dy in range(3) for dx in range(3)])          # (9, HW)
    masks = jnp.broadcast_to(masks[:, None, :], (9, cpad, HW))          # (9, cpad, HW)

    # ---- batch blocking: pack B images per grid step -------------------------
    if images_per_block is None:
        # Keep >= 2 "parallel" grid steps (both v7x TensorCores busy) while
        # amortizing per-step grid/DMA overhead over several images.
        B = max(1, N // 2)
        B = min(B, 8)            # cap static unroll / per-block VMEM footprint
    else:
        B = max(1, int(images_per_block))
    G = -(-N // B)
    Npad = G * B

    io_dtype = jnp.dtype(compute_dtype)    # bf16 I/O halves HBM bytes on v6e/v7x
    x_flat = x_nchw.astype(io_dtype).reshape(N, Cin, HW)
    if Npad != N:
        x_flat = jnp.concatenate(
            [x_flat, jnp.zeros((Npad - N, Cin, HW), io_dtype)], axis=0)

    w1p = w1p.astype(io_dtype)
    w2s = w2s.astype(io_dtype)
    w3p = w3p.astype(io_dtype)

    def const_spec(arr):
        nd = arr.ndim
        return pl.BlockSpec(arr.shape, lambda n, _nd=nd: (0,) * _nd)

    kernel = functools.partial(_bottleneck_kernel, B=B, W=W, HW=HW,
                               mxu_dtype=io_dtype)

    out_flat = pl.pallas_call(
        kernel,
        out_shape=jax.ShapeDtypeStruct((Npad, Cout, HW), io_dtype),
        grid=(G,),
        in_specs=[
            pl.BlockSpec((B, Cin, HW), lambda n: (n, 0, 0)),  # activations: pipelined
            const_spec(w1p), const_spec(b1p),                 # weights/BN/masks:
            const_spec(w2s), const_spec(b2p),                 #   VMEM-resident
            const_spec(w3p), const_spec(b3),
            const_spec(masks),
        ],
        out_specs=pl.BlockSpec((B, Cout, HW), lambda n: (n, 0, 0)),
        compiler_params=pltpu.CompilerParams(
            dimension_semantics=("parallel",)),    # shard batch blocks across TCs
    )(x_flat, w1p, b1p, w2s, b2p, w3p, b3, masks)

    return out_flat[:N].reshape(N, Cout, H, W)


# ----------------------------------------------------------------------------
# Deterministic parameter construction (mirrors nn.Conv2d / nn.BatchNorm2d).
# Conv weights: w1 (Cmid, Cin), w2 HWIO (3,3,Cmid,Cmid), w3 (Cout, Cmid).
# BN folded (inference mode) into per-channel scale/bias of shape (C, 1).
# ----------------------------------------------------------------------------
def make_params(key, inplanes, planes, expansion=4, eps=1e-5):
    cmid = planes // expansion
    ks = jax.random.split(key, 15)

    def fold_bn(k0, k1, k2, k3, c):
        gamma = 1.0 + 0.1 * jax.random.normal(k0, (c,), jnp.float32)
        beta = 0.1 * jax.random.normal(k1, (c,), jnp.float32)
        rmean = 0.05 * jax.random.normal(k2, (c,), jnp.float32)
        rvar = 1.0 + 0.1 * jax.random.uniform(k3, (c,), jnp.float32)
        scale = gamma / jnp.sqrt(rvar + eps)
        bias = beta - rmean * scale
        return scale.reshape(c, 1), bias.reshape(c, 1)

    w1 = 0.1 * jax.random.normal(ks[0], (cmid, inplanes), jnp.float32)
    w2 = 0.1 * jax.random.normal(ks[1], (3, 3, cmid, cmid), jnp.float32)  # HWIO
    w3 = 0.1 * jax.random.normal(ks[2], (planes, cmid), jnp.float32)
    s1, b1 = fold_bn(ks[3], ks[4], ks[5], ks[6], cmid)
    s2, b2 = fold_bn(ks[7], ks[8], ks[9], ks[10], cmid)
    s3, b3 = fold_bn(ks[11], ks[12], ks[13], ks[14], planes)
    return dict(w1=w1, s1=s1, b1=b1, w2=w2, s2=s2, b2=b2, w3=w3, s3=s3, b3=b3)


# ----------------------------------------------------------------------------
# Pure-JAX reference (XLA convs) for numerical verification.
# ----------------------------------------------------------------------------
def reference_forward(x_nchw, p):
    x = jnp.transpose(x_nchw, (0, 2, 3, 1)).astype(jnp.float32)   # NHWC

    def conv(h, w_hwio):
        return jax.lax.conv_general_dilated(
            h, w_hwio, window_strides=(1, 1), padding="SAME",
            dimension_numbers=("NHWC", "HWIO", "NHWC"))

    cmid, cin = p["w1"].shape
    cout = p["w3"].shape[0]
    h = conv(x, p["w1"].T.reshape(1, 1, cin, cmid))
    h = jnp.maximum(h * p["s1"][:, 0] + p["b1"][:, 0], 0.0)
    h = conv(h, p["w2"])
    h = jnp.maximum(h * p["s2"][:, 0] + p["b2"][:, 0], 0.0)
    h = conv(h, p["w3"].T.reshape(1, 1, cmid, cout))
    h = h * p["s3"][:, 0] + p["b3"][:, 0]
    out = jnp.maximum(h + x, 0.0)
    return jnp.transpose(out, (0, 3, 1, 2))


if __name__ == "__main__":
    key = jax.random.PRNGKey(0)
    kx, kp = jax.random.split(key)

    # inplanes = planes = 16 so the identity residual is valid (downsample=None),
    # planes // expansion = 4 (padded to 8 inside the wrapper).
    N, C, H, W = 4, 16, 16, 16
    x = jax.random.normal(kx, (N, C, H, W), jnp.float32)
    params = make_params(kp, inplanes=C, planes=C)

    ref = jax.block_until_ready(reference_forward(x, params))

    # f32 path (default): strict check. B=2 images per grid step, 2 parallel steps.
    out = jax.block_until_ready(bottleneck_forward(x, params))
    assert out.shape == (N, C, H, W)
    err = float(jnp.max(jnp.abs(out - ref)))
    assert jnp.allclose(out, ref, atol=1e-4, rtol=1e-4), err

    # bf16 activation/weight path (v6e / v7x HBM-bound lever): looser tolerance,
    # dots still accumulate in f32.
    out_bf16 = jax.block_until_ready(
        bottleneck_forward(x, params, compute_dtype=jnp.bfloat16)).astype(jnp.float32)
    err_bf = float(jnp.max(jnp.abs(out_bf16 - ref)))
    assert jnp.allclose(out_bf16, ref, atol=7e-2, rtol=7e-2), err_bf

    # Odd batch: exercises the zero-padded final block.
    out_odd = jax.block_until_ready(
        bottleneck_forward(x[:3], params, images_per_block=2))
    err_odd = float(jnp.max(jnp.abs(out_odd - ref[:3])))
    assert jnp.allclose(out_odd, ref[:3], atol=1e-4, rtol=1e-4), err_odd

    print("KERNEL_OK")
</pallas_src>

<mosaic_0001>
module attributes {stable_mosaic.version = 11 : i64} {
  func.func @_bottleneck_kernel(%arg0: i32, %arg1: memref<2x16x256xf32, #tpu.memory_space<vmem>>, %arg2: memref<8x16xf32, #tpu.memory_space<vmem>>, %arg3: memref<8x1xf32, #tpu.memory_space<vmem>>, %arg4: memref<8x72xf32, #tpu.memory_space<vmem>>, %arg5: memref<8x1xf32, #tpu.memory_space<vmem>>, %arg6: memref<16x8xf32, #tpu.memory_space<vmem>>, %arg7: memref<16x1xf32, #tpu.memory_space<vmem>>, %arg8: memref<9x8x256xf32, #tpu.memory_space<vmem>>, %arg9: memref<2x16x256xf32, #tpu.memory_space<vmem>>) attributes {dimension_semantics = [#tpu.dimension_semantics<parallel>], iteration_bounds = array<i64: 2>, scalar_prefetch = 0 : i64, scratch_operands = 0 : i64, tpu.core_type = #tpu.core_type<tc>, window_params = [{transform_indices = @transform_0, window_bounds = array<i64: 2, 16, 256>}, {pipeline_mode = #tpu.pipeline_mode<synchronous>, transform_indices = @transform_1, window_bounds = array<i64: 8, 16>}, {pipeline_mode = #tpu.pipeline_mode<synchronous>, transform_indices = @transform_2, window_bounds = array<i64: 8, 1>}, {pipeline_mode = #tpu.pipeline_mode<synchronous>, transform_indices = @transform_3, window_bounds = array<i64: 8, 72>}, {pipeline_mode = #tpu.pipeline_mode<synchronous>, transform_indices = @transform_4, window_bounds = array<i64: 8, 1>}, {pipeline_mode = #tpu.pipeline_mode<synchronous>, transform_indices = @transform_5, window_bounds = array<i64: 16, 8>}, {pipeline_mode = #tpu.pipeline_mode<synchronous>, transform_indices = @transform_6, window_bounds = array<i64: 16, 1>}, {pipeline_mode = #tpu.pipeline_mode<synchronous>, transform_indices = @transform_7, window_bounds = array<i64: 9, 8, 256>}, {transform_indices = @transform_8, window_bounds = array<i64: 2, 16, 256>}]} {
    %c0 = arith.constant 0 : index
    %c0_0 = arith.constant 0 : index
    %0 = vector.load %arg2[%c0, %c0_0] : memref<8x16xf32, #tpu.memory_space<vmem>>, vector<8x16xf32>
    %c0_1 = arith.constant 0 : index
    %c0_2 = arith.constant 0 : index
    %1 = vector.load %arg4[%c0_1, %c0_2] : memref<8x72xf32, #tpu.memory_space<vmem>>, vector<8x72xf32>
    %c0_3 = arith.constant 0 : index
    %c0_4 = arith.constant 0 : index
    %2 = vector.load %arg6[%c0_3, %c0_4] : memref<16x8xf32, #tpu.memory_space<vmem>>, vector<16x8xf32>
    %c0_5 = arith.constant 0 : index
    %c0_6 = arith.constant 0 : index
    %3 = vector.load %arg3[%c0_5, %c0_6] : memref<8x1xf32, #tpu.memory_space<vmem>>, vector<8x1xf32>
    %c0_7 = arith.constant 0 : index
    %c0_8 = arith.constant 0 : index
    %4 = vector.load %arg5[%c0_7, %c0_8] : memref<8x1xf32, #tpu.memory_space<vmem>>, vector<8x1xf32>
    %c0_9 = arith.constant 0 : index
    %c0_10 = arith.constant 0 : index
    %5 = vector.load %arg7[%c0_9, %c0_10] : memref<16x1xf32, #tpu.memory_space<vmem>>, vector<16x1xf32>
    %c0_11 = arith.constant 0 : index
    %c0_12 = arith.constant 0 : index
    %c0_13 = arith.constant 0 : index
    %6 = vector.load %arg1[%c0_11, %c0_12, %c0_13] : memref<2x16x256xf32, #tpu.memory_space<vmem>>, vector<1x16x256xf32>
    %7 = vector.shape_cast %6 : vector<1x16x256xf32> to vector<16x256xf32>
    %cst = arith.constant dense<0.000000e+00> : vector<8x256xf32>
    %8 = tpu.matmul %0, %7, %cst {dimension_numbers = #tpu.dot_dimension_numbers<[1], [0], [0], [1], [0, 0, 1, 1], [], []>} : vector<8x16xf32>, vector<16x256xf32>, vector<8x256xf32> -> vector<8x256xf32>
    %9 = vector.broadcast %3 : vector<8x1xf32> to vector<8x256xf32>
    %10 = arith.addf %8, %9 : vector<8x256xf32>
    %cst_14 = arith.constant 0.000000e+00 : f32
    %11 = vector.broadcast %cst_14 : f32 to vector<8x256xf32>
    %12 = arith.maximumf %10, %11 : vector<8x256xf32>
    %c17_i32 = arith.constant 17 : i32
    %13 = tpu.dynamic_rotate %12 by %c17_i32 dim 1 : vector<8x256xf32>, i32 -> vector<8x256xf32>
    %c0_15 = arith.constant 0 : index
    %c0_16 = arith.constant 0 : index
    %c0_17 = arith.constant 0 : index
    %14 = vector.load %arg8[%c0_15, %c0_16, %c0_17] : memref<9x8x256xf32, #tpu.memory_space<vmem>>, vector<1x8x256xf32>
    %15 = vector.shape_cast %14 : vector<1x8x256xf32> to vector<8x256xf32>
    %16 = arith.mulf %13, %15 : vector<8x256xf32>
    %c16_i32 = arith.constant 16 : i32
    %17 = tpu.dynamic_rotate %12 by %c16_i32 dim 1 : vector<8x256xf32>, i32 -> vector<8x256xf32>
    %c1 = arith.constant 1 : index
    %c0_18 = arith.constant 0 : index
    %c0_19 = arith.constant 0 : index
    %18 = vector.load %arg8[%c1, %c0_18, %c0_19] : memref<9x8x256xf32, #tpu.memory_space<vmem>>, vector<1x8x256xf32>
    %19 = vector.shape_cast %18 : vector<1x8x256xf32> to vector<8x256xf32>
    %20 = arith.mulf %17, %19 : vector<8x256xf32>
    %c15_i32 = arith.constant 15 : i32
    %21 = tpu.dynamic_rotate %12 by %c15_i32 dim 1 : vector<8x256xf32>, i32 -> vector<8x256xf32>
    %c2 = arith.constant 2 : index
    %c0_20 = arith.constant 0 : index
    %c0_21 = arith.constant 0 : index
    %22 = vector.load %arg8[%c2, %c0_20, %c0_21] : memref<9x8x256xf32, #tpu.memory_space<vmem>>, vector<1x8x256xf32>
    %23 = vector.shape_cast %22 : vector<1x8x256xf32> to vector<8x256xf32>
    %24 = arith.mulf %21, %23 : vector<8x256xf32>
    %c1_i32 = arith.constant 1 : i32
    %25 = tpu.dynamic_rotate %12 by %c1_i32 dim 1 : vector<8x256xf32>, i32 -> vector<8x256xf32>
    %c3 = arith.constant 3 : index
    %c0_22 = arith.constant 0 : index
    %c0_23 = arith.constant 0 : index
    %26 = vector.load %arg8[%c3, %c0_22, %c0_23] : memref<9x8x256xf32, #tpu.memory_space<vmem>>, vector<1x8x256xf32>
    %27 = vector.shape_cast %26 : vector<1x8x256xf32> to vector<8x256xf32>
    %28 = arith.mulf %25, %27 : vector<8x256xf32>
    %c255_i32 = arith.constant 255 : i32
    %29 = tpu.dynamic_rotate %12 by %c255_i32 dim 1 : vector<8x256xf32>, i32 -> vector<8x256xf32>
    %c5 = arith.constant 5 : index
    %c0_24 = arith.constant 0 : index
    %c0_25 = arith.constant 0 : index
    %30 = vector.load %arg8[%c5, %c0_24, %c0_25] : memref<9x8x256xf32, #tpu.memory_space<vmem>>, vector<1x8x256xf32>
    %31 = vector.shape_cast %30 : vector<1x8x256xf32> to vector<8x256xf32>
    %32 = arith.mulf %29, %31 : vector<8x256xf32>
    %c241_i32 = arith.constant 241 : i32
    %33 = tpu.dynamic_rotate %12 by %c241_i32 dim 1 : vector<8x256xf32>, i32 -> vector<8x256xf32>
    %c6 = arith.constant 6 : index
    %c0_26 = arith.constant 0 : index
    %c0_27 = arith.constant 0 : index
    %34 = vector.load %arg8[%c6, %c0_26, %c0_27] : memref<9x8x256xf32, #tpu.memory_space<vmem>>, vector<1x8x256xf32>
    %35 = vector.shape_cast %34 : vector<1x8x256xf32> to vector<8x256xf32>
    %36 = arith.mulf %33, %35 : vector<8x256xf32>
    %c240_i32 = arith.constant 240 : i32
    %37 = tpu.dynamic_rotate %12 by %c240_i32 dim 1 : vector<8x256xf32>, i32 -> vector<8x256xf32>
    %c7 = arith.constant 7 : index
    %c0_28 = arith.constant 0 : index
    %c0_29 = arith.constant 0 : index
    %38 = vector.load %arg8[%c7, %c0_28, %c0_29] : memref<9x8x256xf32, #tpu.memory_space<vmem>>, vector<1x8x256xf32>
    %39 = vector.shape_cast %38 : vector<1x8x256xf32> to vector<8x256xf32>
    %40 = arith.mulf %37, %39 : vector<8x256xf32>
    %c239_i32 = arith.constant 239 : i32
    %41 = tpu.dynamic_rotate %12 by %c239_i32 dim 1 : vector<8x256xf32>, i32 -> vector<8x256xf32>
    %c8 = arith.constant 8 : index
    %c0_30 = arith.constant 0 : index
    %c0_31 = arith.constant 0 : index
    %42 = vector.load %arg8[%c8, %c0_30, %c0_31] : memref<9x8x256xf32, #tpu.memory_space<vmem>>, vector<1x8x256xf32>
    %43 = vector.shape_cast %42 : vector<1x8x256xf32> to vector<8x256xf32>
    %44 = arith.mulf %41, %43 : vector<8x256xf32>
    %45 = tpu.concatenate %16, %20, %24, %28, %12, %32, %36, %40, %44 in 0 : vector<8x256xf32>, vector<8x256xf32>, vector<8x256xf32>, vector<8x256xf32>, vector<8x256xf32>, vector<8x256xf32>, vector<8x256xf32>, vector<8x256xf32>, vector<8x256xf32> -> vector<72x256xf32>
    %cst_32 = arith.constant dense<0.000000e+00> : vector<8x256xf32>
    %46 = tpu.matmul %1, %45, %cst_32 {dimension_numbers = #tpu.dot_dimension_numbers<[1], [0], [0], [1], [0, 0, 1, 1], [], []>} : vector<8x72xf32>, vector<72x256xf32>, vector<8x256xf32> -> vector<8x256xf32>
    %47 = vector.broadcast %4 : vector<8x1xf32> to vector<8x256xf32>
    %48 = arith.addf %46, %47 : vector<8x256xf32>
    %cst_33 = arith.constant 0.000000e+00 : f32
    %49 = vector.broadcast %cst_33 : f32 to vector<8x256xf32>
    %50 = arith.maximumf %48, %49 : vector<8x256xf32>
    %cst_34 = arith.constant dense<0.000000e+00> : vector<16x256xf32>
    %51 = tpu.matmul %2, %50, %cst_34 {dimension_numbers = #tpu.dot_dimension_numbers<[1], [0], [0], [1], [0, 0, 1, 1], [], []>} : vector<16x8xf32>, vector<8x256xf32>, vector<16x256xf32> -> vector<16x256xf32>
    %52 = vector.broadcast %5 : vector<16x1xf32> to vector<16x256xf32>
    %53 = arith.addf %51, %52 : vector<16x256xf32>
    %54 = arith.addf %53, %7 : vector<16x256xf32>
    %cst_35 = arith.constant 0.000000e+00 : f32
    %55 = vector.broadcast %cst_35 : f32 to vector<16x256xf32>
    %56 = arith.maximumf %54, %55 : vector<16x256xf32>
    %c0_36 = arith.constant 0 : index
    %c0_37 = arith.constant 0 : index
    %c0_38 = arith.constant 0 : index
    %57 = vector.load %arg9[%c0_36, %c0_37, %c0_38] : memref<2x16x256xf32, #tpu.memory_space<vmem>>, vector<1x16x256xf32>
    %58 = vector.shape_cast %57 : vector<1x16x256xf32> to vector<16x256xf32>
    %59 = vector.shape_cast %56 : vector<16x256xf32> to vector<1x16x256xf32>
    tpu.vector_store %arg9[%c0_36, %c0_37, %c0_38], %59 {strides = array<i32>} : memref<2x16x256xf32, #tpu.memory_space<vmem>>, vector<1x16x256xf32>,
    %c1_39 = arith.constant 1 : index
    %c0_40 = arith.constant 0 : index
    %c0_41 = arith.constant 0 : index
    %60 = vector.load %arg1[%c1_39, %c0_40, %c0_41] : memref<2x16x256xf32, #tpu.memory_space<vmem>>, vector<1x16x256xf32>
    %61 = vector.shape_cast %60 : vector<1x16x256xf32> to vector<16x256xf32>
    %cst_42 = arith.constant dense<0.000000e+00> : vector<8x256xf32>
    %62 = tpu.matmul %0, %61, %cst_42 {dimension_numbers = #tpu.dot_dimension_numbers<[1], [0], [0], [1], [0, 0, 1, 1], [], []>} : vector<8x16xf32>, vector<16x256xf32>, vector<8x256xf32> -> vector<8x256xf32>
    %63 = vector.broadcast %3 : vector<8x1xf32> to vector<8x256xf32>
    %64 = arith.addf %62, %63 : vector<8x256xf32>
    %cst_43 = arith.constant 0.000000e+00 : f32
    %65 = vector.broadcast %cst_43 : f32 to vector<8x256xf32>
    %66 = arith.maximumf %64, %65 : vector<8x256xf32>
    %c17_i32_44 = arith.constant 17 : i32
    %67 = tpu.dynamic_rotate %66 by %c17_i32_44 dim 1 : vector<8x256xf32>, i32 -> vector<8x256xf32>
    %c0_45 = arith.constant 0 : index
    %c0_46 = arith.constant 0 : index
    %c0_47 = arith.constant 0 : index
    %68 = vector.load %arg8[%c0_45, %c0_46, %c0_47] : memref<9x8x256xf32, #tpu.memory_space<vmem>>, vector<1x8x256xf32>
    %69 = vector.shape_cast %68 : vector<1x8x256xf32> to vector<8x256xf32>
    %70 = arith.mulf %67, %69 : vector<8x256xf32>
    %c16_i32_48 = arith.constant 16 : i32
    %71 = tpu.dynamic_rotate %66 by %c16_i32_48 dim 1 : vector<8x256xf32>, i32 -> vector<8x256xf32>
    %c1_49 = arith.constant 1 : index
    %c0_50 = arith.constant 0 : index
    %c0_51 = arith.constant 0 : index
    %72 = vector.load %arg8[%c1_49, %c0_50, %c0_51] : memref<9x8x256xf32, #tpu.memory_space<vmem>>, vector<1x8x256xf32>
    %73 = vector.shape_cast %72 : vector<1x8x256xf32> to vector<8x256xf32>
    %74 = arith.mulf %71, %73 : vector<8x256xf32>
    %c15_i32_52 = arith.constant 15 : i32
    %75 = tpu.dynamic_rotate %66 by %c15_i32_52 dim 1 : vector<8x256xf32>, i32 -> vector<8x256xf32>
    %c2_53 = arith.constant 2 : index
    %c0_54 = arith.constant 0 : index
    %c0_55 = arith.constant 0 : index
    %76 = vector.load %arg8[%c2_53, %c0_54, %c0_55] : memref<9x8x256xf32, #tpu.memory_space<vmem>>, vector<1x8x256xf32>
    %77 = vector.shape_cast %76 : vector<1x8x256xf32> to vector<8x256xf32>
    %78 = arith.mulf %75, %77 : vector<8x256xf32>
    %c1_i32_56 = arith.constant 1 : i32
    %79 = tpu.dynamic_rotate %66 by %c1_i32_56 dim 1 : vector<8x256xf32>, i32 -> vector<8x256xf32>
    %c3_57 = arith.constant 3 : index
    %c0_58 = arith.constant 0 : index
    %c0_59 = arith.constant 0 : index
    %80 = vector.load %arg8[%c3_57, %c0_58, %c0_59] : memref<9x8x256xf32, #tpu.memory_space<vmem>>, vector<1x8x256xf32>
    %81 = vector.shape_cast %80 : vector<1x8x256xf32> to vector<8x256xf32>
    %82 = arith.mulf %79, %81 : vector<8x256xf32>
    %c255_i32_60 = arith.constant 255 : i32
    %83 = tpu.dynamic_rotate %66 by %c255_i32_60 dim 1 : vector<8x256xf32>, i32 -> vector<8x256xf32>
    %c5_61 = arith.constant 5 : index
    %c0_62 = arith.constant 0 : index
    %c0_63 = arith.constant 0 : index
    %84 = vector.load %arg8[%c5_61, %c0_62, %c0_63] : memref<9x8x256xf32, #tpu.memory_space<vmem>>, vector<1x8x256xf32>
    %85 = vector.shape_cast %84 : vector<1x8x256xf32> to vector<8x256xf32>
    %86 = arith.mulf %83, %85 : vector<8x256xf32>
    %c241_i32_64 = arith.constant 241 : i32
    %87 = tpu.dynamic_rotate %66 by %c241_i32_64 dim 1 : vector<8x256xf32>, i32 -> vector<8x256xf32>
    %c6_65 = arith.constant 6 : index
    %c0_66 = arith.constant 0 : index
    %c0_67 = arith.constant 0 : index
    %88 = vector.load %arg8[%c6_65, %c0_66, %c0_67] : memref<9x8x256xf32, #tpu.memory_space<vmem>>, vector<1x8x256xf32>
    %89 = vector.shape_cast %88 : vector<1x8x256xf32> to vector<8x256xf32>
    %90 = arith.mulf %87, %89 : vector<8x256xf32>
    %c240_i32_68 = arith.constant 240 : i32
    %91 = tpu.dynamic_rotate %66 by %c240_i32_68 dim 1 : vector<8x256xf32>, i32 -> vector<8x256xf32>
    %c7_69 = arith.constant 7 : index
    %c0_70 = arith.constant 0 : index
    %c0_71 = arith.constant 0 : index
    %92 = vector.load %arg8[%c7_69, %c0_70, %c0_71] : memref<9x8x256xf32, #tpu.memory_space<vmem>>, vector<1x8x256xf32>
    %93 = vector.shape_cast %92 : vector<1x8x256xf32> to vector<8x256xf32>
    %94 = arith.mulf %91, %93 : vector<8x256xf32>
    %c239_i32_72 = arith.constant 239 : i32
    %95 = tpu.dynamic_rotate %66 by %c239_i32_72 dim 1 : vector<8x256xf32>, i32 -> vector<8x256xf32>
    %c8_73 = arith.constant 8 : index
    %c0_74 = arith.constant 0 : index
    %c0_75 = arith.constant 0 : index
    %96 = vector.load %arg8[%c8_73, %c0_74, %c0_75] : memref<9x8x256xf32, #tpu.memory_space<vmem>>, vector<1x8x256xf32>
    %97 = vector.shape_cast %96 : vector<1x8x256xf32> to vector<8x256xf32>
    %98 = arith.mulf %95, %97 : vector<8x256xf32>
    %99 = tpu.concatenate %70, %74, %78, %82, %66, %86, %90, %94, %98 in 0 : vector<8x256xf32>, vector<8x256xf32>, vector<8x256xf32>, vector<8x256xf32>, vector<8x256xf32>, vector<8x256xf32>, vector<8x256xf32>, vector<8x256xf32>, vector<8x256xf32> -> vector<72x256xf32>
    %cst_76 = arith.constant dense<0.000000e+00> : vector<8x256xf32>
    %100 = tpu.matmul %1, %99, %cst_76 {dimension_numbers = #tpu.dot_dimension_numbers<[1], [0], [0], [1], [0, 0, 1, 1], [], []>} : vector<8x72xf32>, vector<72x256xf32>, vector<8x256xf32> -> vector<8x256xf32>
    %101 = vector.broadcast %4 : vector<8x1xf32> to vector<8x256xf32>
    %102 = arith.addf %100, %101 : vector<8x256xf32>
    %cst_77 = arith.constant 0.000000e+00 : f32
    %103 = vector.broadcast %cst_77 : f32 to vector<8x256xf32>
    %104 = arith.maximumf %102, %103 : vector<8x256xf32>
    %cst_78 = arith.constant dense<0.000000e+00> : vector<16x256xf32>
    %105 = tpu.matmul %2, %104, %cst_78 {dimension_numbers = #tpu.dot_dimension_numbers<[1], [0], [0], [1], [0, 0, 1, 1], [], []>} : vector<16x8xf32>, vector<8x256xf32>, vector<16x256xf32> -> vector<16x256xf32>
    %106 = vector.broadcast %5 : vector<16x1xf32> to vector<16x256xf32>
    %107 = arith.addf %105, %106 : vector<16x256xf32>
    %108 = arith.addf %107, %61 : vector<16x256xf32>
    %cst_79 = arith.constant 0.000000e+00 : f32
    %109 = vector.broadcast %cst_79 : f32 to vector<16x256xf32>
    %110 = arith.maximumf %108, %109 : vector<16x256xf32>
    %c1_80 = arith.constant 1 : index
    %c0_81 = arith.constant 0 : index
    %c0_82 = arith.constant 0 : index
    %111 = vector.load %arg9[%c1_80, %c0_81, %c0_82] : memref<2x16x256xf32, #tpu.memory_space<vmem>>, vector<1x16x256xf32>
    %112 = vector.shape_cast %111 : vector<1x16x256xf32> to vector<16x256xf32>
    %113 = vector.shape_cast %110 : vector<16x256xf32> to vector<1x16x256xf32>
    tpu.vector_store %arg9[%c1_80, %c0_81, %c0_82], %113 {strides = array<i32>} : memref<2x16x256xf32, #tpu.memory_space<vmem>>, vector<1x16x256xf32>,
    return
  }
  func.func @transform_0(%arg0: i32) -> (i32, i32, i32) {
    %c0_i32 = arith.constant 0 : i32
    %c0_i32_0 = arith.constant 0 : i32
    %c0_i32_1 = arith.constant 0 : i32
    return %arg0, %c0_i32, %c0_i32_0 : i32, i32, i32
  }
  func.func @transform_1(%arg0: i32) -> (i32, i32) {
    %c0_i32 = arith.constant 0 : i32
    %c0_i32_0 = arith.constant 0 : i32
    %c0_i32_1 = arith.constant 0 : i32
    return %c0_i32, %c0_i32_0 : i32, i32
  }
  func.func @transform_2(%arg0: i32) -> (i32, i32) {
    %c0_i32 = arith.constant 0 : i32
    %c0_i32_0 = arith.constant 0 : i32
    %c0_i32_1 = arith.constant 0 : i32
    return %c0_i32, %c0_i32_0 : i32, i32
  }
  func.func @transform_3(%arg0: i32) -> (i32, i32) {
    %c0_i32 = arith.constant 0 : i32
    %c0_i32_0 = arith.constant 0 : i32
    %c0_i32_1 = arith.constant 0 : i32
    return %c0_i32, %c0_i32_0 : i32, i32
  }
  func.func @transform_4(%arg0: i32) -> (i32, i32) {
    %c0_i32 = arith.constant 0 : i32
    %c0_i32_0 = arith.constant 0 : i32
    %c0_i32_1 = arith.constant 0 : i32
    return %c0_i32, %c0_i32_0 : i32, i32
  }
  func.func @transform_5(%arg0: i32) -> (i32, i32) {
    %c0_i32 = arith.constant 0 : i32
    %c0_i32_0 = arith.constant 0 : i32
    %c0_i32_1 = arith.constant 0 : i32
    return %c0_i32, %c0_i32_0 : i32, i32
  }
  func.func @transform_6(%arg0: i32) -> (i32, i32) {
    %c0_i32 = arith.constant 0 : i32
    %c0_i32_0 = arith.constant 0 : i32
    %c0_i32_1 = arith.constant 0 : i32
    return %c0_i32, %c0_i32_0 : i32, i32
  }
  func.func @transform_7(%arg0: i32) -> (i32, i32, i32) {
    %c0_i32 = arith.constant 0 : i32
    %c0_i32_0 = arith.constant 0 : i32
    %c0_i32_1 = arith.constant 0 : i32
    %c0_i32_2 = arith.constant 0 : i32
    return %c0_i32, %c0_i32_0, %c0_i32_1 : i32, i32, i32
  }
  func.func @transform_8(%arg0: i32) -> (i32, i32, i32) {
    %c0_i32 = arith.constant 0 : i32
    %c0_i32_0 = arith.constant 0 : i32
    %c0_i32_1 = arith.constant 0 : i32
    return %arg0, %c0_i32, %c0_i32_0 : i32, i32, i32
  }
}

</mosaic_0001>

<bundles_post_ra>
// kernel: tpu_custom_call.1
= control target key start
LH: loop header
LB: loop body
LE: loop exit
PB: predicated region body
PF: predicated region fallthrough
CT: control target
= control target key end

     0   :  { %13 = vsyncpa [#allocation3], 0  ;;  %s2040_s0 = inlined_call_operand.hbm [shape: f32[4,16,256], index: 0, kind: input, shape index: {}]   ;;  %s2041_s1 = inlined_call_operand.vmem [shape: f32[8,16], index: 1, kind: input, shape index: {}]   ;;  %s2042_s2 = inlined_call_operand.vmem [shape: f32[8,1], index: 2, kind: input, shape index: {}]   ;;  %s2043_s3 = inlined_call_operand.vmem [shape: f32[8,72], index: 3, kind: input, shape index: {}]   ;;  %s2044_s4 = inlined_call_operand.vmem [shape: f32[8,1], index: 4, kind: input, shape index: {}]   ;;  %s2045_s5 = inlined_call_operand.vmem [shape: f32[16,8], index: 5, kind: input, shape index: {}]   ;;  %s2046_s6 = inlined_call_operand.vmem [shape: f32[16,1], index: 6, kind: input, shape index: {}]   ;;  %s2047_s7 = inlined_call_operand.hbm [shape: f32[9,8,256], index: 7, kind: input, shape index: {}]   ;;  %s2048_s8 = inlined_call_operand.hbm [shape: f32[4,16,256], index: 8, kind: output, shape index: {}]  }
   0x1   :  { %15 = vsyncpa [#allocation3 + $0x1], 0 }
   0x2   :  { %16 = vsyncpa [#allocation6], 0 }
   0x3   :  { %17 = vsyncpa [#allocation4], 0 }
   0x4   :  { %19 = vsyncpa [#allocation4 + $0x1], 0  ;;  %s1481_s27 = smov 0   ;;  %s1483_s28 = smov 0  }
   0x5   :  { %s1485_s29 = smov 0   ;;  %s1487_s30 = smov 0  }
   0x6 LB: > { %s1502_s9 = sadd.s32 4294967295, %s1418_s30   ;;  %s1140_s10 = sadd.s32 4294967294, %s1418_s30   ;;  %s1418_s30 = sphi %s1487_s30, %s2070_s30   ;;  %s1414_s29 = sphi %s1485_s29, %s2073_s29   ;;  %s1410_s28 = sphi %s1483_s28, %s2072_s28   ;;  %s1406_s27 = sphi %s1481_s27, %s2071_s27  }
   0x7   : > { %p45_p0 = scmp.ne.s32.totalorder %s1410_s28, %s1406_s27  ;;  %p2049_p1 = scmp.eq.s32.totalorder %s1502_s9, 0 }
   0x8   : > { %p222_p3 = scmp.eq.s32.totalorder %s1140_s10, 1  ;;  %p1141_p5 = scmp.ge.s32.totalorder %s1418_s30, 1 }
   0x9   : > { %p1511_p4 = por %p2049_p1, %p45_p0  ;;  %p229_p7 = scmp.lt.s32.totalorder %s1418_s30, 3 }
   0xa   : > { %p1516_p6 = por %p222_p3, %p45_p0  ;;  %s1420_s14 = smov [#allocation5]  }
   0xb   : > { %s2055_s11 = scalar_select %p1511_p4, 1, 0 }
   0xc   : > { %s2056_s12 = scalar_select %p1516_p6, 1, 0 }
   0xd   : > { %p1521_p8 = pnand %p1141_p5, %p229_p7  ;;  %s259_s15 = sshll.u32 %s1420_s14, 4  ;;  %s1525_s15 = int_to_ptr.vmem [resolvable:$true] %s259_s15 }
   0xe   : > { %s1537_s17 = sadd.s32 1, %s1418_s30   ;;  %s32_s18 = sadd.s32 1, %s1414_s29 }
   0xf   : > { %s2057_s13 = scalar_select %p1521_p8, 1, 0 }
  0x10   : > { %p1226_p9 = pneg %p1521_p8  ;;  %2059 = sst [smem:[#allocation11_spill]] %s1537_s17 }
  0x11   : > { %s29_s19 = ssub.s32 %s1418_s30, %s1537_s17  ;;  %s1290_s22 = scalar_lea.hbm %s2047_s7, 2304 }
  0x12   : > { %p1532_p11 = pnand %p1226_p9, %p2049_p1  ;;  %p1291_p12 = scmp.ne.s32.totalorder %s2047_s7, %s1290_s22 }
  0x13   : > { %p1297_p5 = scmp.lt.u32.totalorder %s1290_s22, %s2047_s7 }
  0x14   : > { %p1292_p13 = pneg %p1532_p11 }
  0x16   : > { %p1293_p0 = pnand %p1292_p13, %p1291_p12 }
  0x18   : > { %p1294_p3 = pneg %p1293_p0 }
  0x1a   : > { %p1299_p7 = pnand %p1297_p5, %p1294_p3 }
  0x1c   : > { %1302 = shalt.err (!%p1299_p7)
}
  0x1d   : > { %s1303_s10 = scalar_lea.vmem %s1525_s15, 2304  ;;  %p1311_p2 = scmp.lt.s32.totalorder %s1525_s15, %s1525_s15 }
  0x1e   : > { %p1304_p9 = scmp.ne.s32.totalorder %s1525_s15, %s1303_s10  ;;  %p1312_p6 = scmp.lt.s32.totalorder %s1303_s10, %s1303_s10 }
  0x20   : > { %p1306_p10 = pnand %p1304_p9, %p1292_p13  ;;  %p1313_p4 = por %p1312_p6, %p1311_p2 }
  0x22   : > { %p1307_p1 = pneg %p1306_p10 }
  0x24   : > { %p1314_p8 = pnand %p1313_p4, %p1307_p1 }
  0x26   : > { %1317 = shalt.err (!%p1314_p8)
}
  0x27   : > { %s2054_s14 = smov 256   ;;  %s1422_s20 = smov 16  }
  0x28   : > { %1229 = dma.hbm_to_vmem [thread:$0]  (!%p1532_p11), %s2047_s7, 2304, %s1525_s15, [#allocation6], %s2054_s14, %s2054_s14, %s1422_s20  }
  0x29   : > { %p30_p1 = scmp.eq.s32.totalorder %s29_s19, 0  ;;  %p39_p2 = scmp.ne.s32.totalorder %s1414_s29, %s1410_s28 }
  0x2a   : > { %p40_p4 = scmp.eq.s32.totalorder %s1418_s30, 0  ;;  %p1239_p6 = scmp.lt.s32.totalorder %s1418_s30, 2 }
  0x2b   : > { %s1571_s23 = scalar_select %p30_p1, %s1414_s29, %s32_s18  }
  0x2c   : > { %p41_p8 = por %p40_p4, %p39_p2  ;;  %p2060_p10 = scmp.eq.s32.totalorder %s1502_s9, 1 }
  0x2d   : > { %s273_s16 = sand.u32 1, %s1414_s29   ;;  %s1175_s25 = sshll.u32 %s1418_s30, 10 }
  0x2e   : > { %p1575_p12 = por %p2060_p10, %p39_p2  ;;  %s1144_s26 = sshll.u32 %s273_s16, 6 }
  0x2f   : > { %s1584_s21 = scalar_lea.hbm %s2040_s0, %s1175_s25  ;;  %s277_s15 = scalar_lea.vmem [#allocation2], %s1144_s26 }
  0x30   : > { %s285_s18 = sshll.u32 %s277_s15, 4  ;;  %p1586_p11 = pnand %p1239_p6, %p41_p8  ;;  %s1590_s18 = int_to_ptr.vmem [resolvable:$true] %s285_s18 }
  0x31   : > { %s1592_s22 = scalar_lea.sflag [#allocation3], %s273_s16  ;;  %s1318_s14 = scalar_lea.hbm %s1584_s21, 1024 }
  0x32   : > { %p1319_p13 = scmp.ne.s32.totalorder %s1584_s21, %s1318_s14  ;;  %p1320_p0 = pneg %p1586_p11 }
  0x33   : > { %s1323_s26 = scalar_lea.hbm %s2040_s0, 2048  ;;  %p1324_p7 = scmp.lt.u32.totalorder %s1584_s21, %s2040_s0 }
  0x34   : > { %p1321_p3 = pnand %p1320_p0, %p1319_p13  ;;  %p1325_p9 = scmp.lt.u32.totalorder %s1323_s26, %s1318_s14 }
  0x35   : > { %p1327_p2 = scmp.lt.u32.totalorder %s1318_s14, %s1584_s21 }
  0x36   : > { %p1322_p5 = pneg %p1321_p3  ;;  %p1326_p1 = por %p1325_p9, %p1324_p7 }
  0x38   : > { %p1328_p4 = por %p1327_p2, %p1326_p1 }
  0x3a   : > { %p1329_p6 = pnand %p1328_p4, %p1322_p5 }
  0x3c   : > { %1332 = shalt.err (!%p1329_p6)
}
  0x3d   : > { %s1333_s16 = scalar_lea.vmem %s1590_s18, 1024  ;;  %s1423_s17 = smov [#allocation2]  }
  0x3e   : > { %p1334_p8 = scmp.ne.s32.totalorder %s1590_s18, %s1333_s16  ;;  %s1338_s25 = sshll.u32 %s1423_s17, 4  ;;  %s1339_s25 = int_to_ptr.vmem [resolvable:$false] %s1338_s25 }
  0x3f   : > { %s1340_s10 = scalar_lea.vmem %s1339_s25, 2048  ;;  %p1341_p3 = scmp.lt.s32.totalorder %s1590_s18, %s1339_s25 }
  0x40   : > { %p1336_p10 = pnand %p1334_p8, %p1320_p0  ;;  %p1342_p7 = scmp.lt.s32.totalorder %s1340_s10, %s1333_s16 }
  0x42   : > { %p1337_p13 = pneg %p1336_p10  ;;  %p1343_p9 = por %p1342_p7, %p1341_p3 }
  0x44   : > { %p1344_p1 = pnand %p1343_p9, %p1337_p13 }
  0x46   : > { %1347 = shalt.err (!%p1344_p1)
}
  0x47   : > { %s2063_s14 = smov 256   ;;  %p2064_p0 = scmp.ne.s32.totalorder %s2057_s13, 0 }
  0x48   : > { %1233 = dma.hbm_to_vmem [thread:$0]  (!%p1586_p11), %s1584_s21, 1024, %s1590_s18, %s1592_s22, %s2063_s14, %s2063_s14, %s1422_s20  }
  0x49   : > { %297 = sbr.rel (%p2064_p0) target bundleno = 1508 (0x5e4), region = 52  ;;  %s1626_s26 = sand.u32 (!%p2064_p0), 1, %s1410_s28  }
  0x4a   : > { %s1149_s15 = sshll.u32 (!%p2064_p0), %s1626_s26, 6  ;;  %s300_s16 = scalar_lea.sflag (!%p2064_p0), [#allocation3], %s1626_s26 }
  0x4b   : > { %s1632_s19 = scalar_lea.vmem (!%p2064_p0), [#allocation2], %s1149_s15  ;;  %p2065_p5 = scmp.ne.s32.totalorder (!%p2064_p0), %s2055_s11, 0 }
  0x50   : > { %1393 = dma.done.wait (%p2065_p5), %s300_s16, 1024  }
  0x51   : > { %1395 = vsyncadd (%p2065_p5), %s300_s16, 4294966272  ;;  %p2066_p11 = scmp.eq.s32.totalorder %s1502_s9, 0 }
  0x53   : > { %1397 = dma.done.wait (%p2066_p11), [#allocation6], 2304   ;;  %p2067_p2 = pmov %p2066_p11 }
  0x54   : > { %v1424_v0 = vmov 0.0   ;;  %v1425_v1 = vmov 0   ;;  %v1645_v2 = vld [vmem:[%s1632_s19 + $0x8] sm:$0xff]  ;;  %v1648_v3 = vld [vmem:[%s1632_s19 + $0x18] sm:$0xff]  ;;  %v1651_v4 = vld [vmem:[%s1632_s19] sm:$0xff]  ;;  %vm359_vm0 = vcmask 130048   ;;  %v440_v18 = vlaneseq }
  0x55   : > { %1399 = vsyncadd (%p2067_p2), [#allocation6], 4294964992  ;;  %427 = vmatprep.mubr.f32.mxu1 %v1424_v0  ;;  %1288 = vset.pattern.permute.xlu0 %v1425_v1  ;;  %v1178_v5 = vpack.c.bf16 %v1648_v3, %v1645_v2  ;;  %v1656_v6 = vld [vmem:[%s1632_s19 + $0x10] sm:$0xff]  ;;  %v346_v7 = vld [vmem:[%s2042_s2] sm:$0xff]  ;;  %s1426_s18 = smov 16   ;;  %s1427_s22 = smov 17  }
  0x56   : > { %1289 = vset.pattern.permute.xlu1 %v1425_v1  ;;  %696 = vmatprep.mubr.f32.mxu0 %v1424_v0  ;;  %v1180_v8 = vpack.c.bf16 %v1656_v6, %v1651_v4  ;;  %v1666_v9 = vld [vmem:[%s2041_s1] sm:$0xff]  ;;  %s1428_s17 = smov 15   ;;  %s1429_s25 = smov 1   ;;  %v1714_v21 = vand.u32 127, %v440_v18  ;;  %v1717_v26 = vld [vmem:[#allocation5 + $0x10] sm:$0xff]  ;;  %v1719_v27 = vld [vmem:[#allocation5 + $0x18] sm:$0xff] }
  0x57   : > { %356 = vperm.xlu0 %1288, %v346_v7   ;;  %1179 = vmatprep.subr.bf16.mxu1 %v1178_v5  ;;  %s1430_s10 = smov 127   ;;  %s1431_s14 = smov 113   ;;  %v347_v17 = vld [vmem:[%s2044_s4] sm:$0xff]  ;;  %v1730_v31 = vld [vmem:[#allocation5 + $0x8] sm:$0xff]  ;;  %v1732_v32 = vld [vmem:[#allocation5 + $0x38] sm:$0xff]  ;;  %vm538_vm9 = vcmask 588800  }
  0x58   : > { %1181 = vmatpush1.bf16.msra.mxu1 %v1180_v8  ;;  %s1432_s16 = smov 112   ;;  %s1433_s11 = smov 111   ;;  %vm453_vm1 = vcmp.lt.s32.totalorder %v1714_v21, 16  ;;  %vm465_vm2 = vcmp.lt.s32.totalorder %v1714_v21, 15  ;;  %vm442_vm3 = vcmp.lt.s32.totalorder %v1714_v21, 17  ;;  %vm477_vm4 = vcmp.lt.s32.totalorder %v1714_v21, 1 }
  0x59   : > { %v1728_v30 = vld [vmem:[#allocation5] sm:$0xff]  ;;  %vm489_vm5 = vcmp.lt.s32.totalorder %v1714_v21, 127  ;;  %v1737_v37 = vld [vmem:[#allocation5 + $0x28] sm:$0xff]  ;;  %v1749_v44 = vld [vmem:[#allocation5 + $0x30] sm:$0xff]  ;;  %vm501_vm6 = vcmp.lt.s32.totalorder %v1714_v21, 113  ;;  %vm513_vm7 = vcmp.lt.s32.totalorder %v1714_v21, 112 }
  0x5a   : > { %v1754_v47 = vld [vmem:[#allocation5 + $0x58] sm:$0xff]  ;;  %v1756_v48 = vld [vmem:[#allocation5 + $0x20] sm:$0xff]  ;;  %v1764_v57 = vld [vmem:[#allocation5 + $0x50] sm:$0xff]  ;;  %vm525_vm8 = vcmp.lt.s32.totalorder %v1714_v21, 111  ;;  %vm625_vm10 = vcmask 64512   ;;  %s1434_s13 = smov [#allocation7]  }
  0x5b   : > { %1152 = vmatmul.mubr.msk.f32.vlgmr.msra.gmra.mrb[0].mxu1 %vm359_vm0, %v1666_v9  ;;  %v1772_v7 = vld [vmem:[#allocation5 + $0x60] sm:$0xff] }
  0x5c   : > { %606 = vmatprep.mubr.f32.mxu1 %v1424_v0 }
  0xd6   : > { %v1671_v10 = vpop.permute.xlu0 %356 }
 0x12e   : > { %v429_v11 = vpop.f32.mrb[0].mxu1 }
 0x12f   : > { %v430_v12 = vadd.f32 %v429_v11, %v1671_v10  ;;  %v431_v13 = vpop.f32.mrb[1].mxu1  ;;  %v1776_v11 = vld [vmem:[#allocation5 + $0x68] sm:$0xff] }
 0x130   : > { %v432_v15 = vadd.f32 %v431_v13, %v1671_v10 }
 0x131   : > { %v1674_v14 = vmax.f32 %v430_v12, 0.0 }
 0x132   : > { %v1681_v16 = vmax.f32 %v432_v15, 0.0  ;;  %v1782_v15 = vld [vmem:[#allocation5 + $0x70] sm:$0xff] }
 0x133   : > { %449 = vrot.lane.b32.xlu1 %v1674_v14, %s1426_s18  ;;  %436 = vrot.lane.b32.xlu0 %v1674_v14, %s1427_s22 }
 0x137   : > { %461 = vrot.lane.b32.xlu1 %v1674_v14, %s1428_s17  ;;  %451 = vrot.lane.b32.xlu0 %v1681_v16, %s1426_s18 }
 0x13b   : > { %473 = vrot.lane.b32.xlu1 %v1674_v14, %s1429_s25  ;;  %463 = vrot.lane.b32.xlu0 %v1681_v16, %s1428_s17 }
 0x13f   : > { %438 = vrot.lane.b32.xlu1 %v1681_v16, %s1427_s22  ;;  %475 = vrot.lane.b32.xlu0 %v1681_v16, %s1429_s25 }
 0x143   : > { %485 = vrot.lane.b32.xlu1 %v1674_v14, %s1430_s10  ;;  %487 = vrot.lane.b32.xlu0 %v1681_v16, %s1430_s10 }
 0x147   : > { %497 = vrot.lane.b32.xlu1 %v1674_v14, %s1431_s14  ;;  %499 = vrot.lane.b32.xlu0 %v1681_v16, %s1431_s14 }
 0x14b   : > { %509 = vrot.lane.b32.xlu1 %v1674_v14, %s1432_s16  ;;  %511 = vrot.lane.b32.xlu0 %v1681_v16, %s1432_s16 }
 0x14f   : > { %521 = vrot.lane.b32.xlu1 %v1674_v14, %s1433_s11  ;;  %523 = vrot.lane.b32.xlu0 %v1681_v16, %s1433_s11 }
 0x153   : > { %535 = vperm.xlu1 %1289, %v347_v17   ;;  %v1784_v17 = vld [vmem:[#allocation5 + $0x78] sm:$0xff] }
 0x1a5   : > { %v450_v19 = vpop.permute.xlu1 %449  ;;  %v437_v20 = vpop.permute.xlu0 %436 }
 0x1a9   : > { %v462_v22 = vpop.permute.xlu1 %461  ;;  %v452_v23 = vpop.permute.xlu0 %451 }
 0x1aa   : > { %v454_v28 = vsel %vm453_vm1, %v450_v19, %v452_v23  ;;  %v455_v29 = vsel %vm453_vm1, %v452_v23, %v450_v19 }
 0x1ab   : > { %v459_v33 = vmul.f32 %v1717_v26, %v455_v29  ;;  %v460_v34 = vmul.f32 %v1719_v27, %v454_v28  ;;  %v1796_v29 = vld [vmem:[#allocation5 + $0x88] sm:$0xff] }
 0x1ad   : > { %v474_v24 = vpop.permute.xlu1 %473  ;;  %v464_v25 = vpop.permute.xlu0 %463 }
 0x1ae   : > { %v466_v38 = vsel %vm465_vm2, %v462_v22, %v464_v25  ;;  %v467_v49 = vsel %vm465_vm2, %v464_v25, %v462_v22 }
 0x1af   : > { %v472_v50 = vmul.f32 %v1737_v37, %v466_v38  ;;  %v471_v61 = vmul.f32 %v1756_v48, %v467_v49  ;;  %v1800_v38 = vld [vmem:[#allocation5 + $0x80] sm:$0xff] }
 0x1b1   : > { %v439_v35 = vpop.permute.xlu1 %438  ;;  %v476_v36 = vpop.permute.xlu0 %475 }
 0x1b2   : > { %v443_v39 = vsel %vm442_vm3, %v437_v20, %v439_v35  ;;  %v444_v40 = vsel %vm442_vm3, %v439_v35, %v437_v20  ;;  %v478_v41 = vsel %vm477_vm4, %v474_v24, %v476_v36  ;;  %v479_v45 = vsel %vm477_vm4, %v476_v36, %v474_v24 }
 0x1b3   : > { %v447_v42 = vmul.f32 %v1728_v30, %v444_v40  ;;  %v448_v43 = vmul.f32 %v1730_v31, %v443_v39  ;;  %v484_v46 = vmul.f32 %v1732_v32, %v478_v41  ;;  %v483_v55 = vmul.f32 %v1749_v44, %v479_v45 }
 0x1b5   : > { %v1184_v51 = vpack.c.bf16 %v459_v33, %v447_v42  ;;  %v486_v52 = vpop.permute.xlu1 %485  ;;  %v488_v53 = vpop.permute.xlu0 %487  ;;  %v1182_v54 = vpack.c.bf16 %v460_v34, %v448_v43  ;;  %v1186_v60 = vpack.c.bf16 %v484_v46, %v472_v50  ;;  %v1188_v1 = vpack.c.bf16 %v483_v55, %v471_v61  ;;  %v1809_v42 = vld [vmem:[%s2043_s3] sm:$0xff]  ;;  %v1818_v50 = vld [vmem:[%s1632_s19 + $0x28] sm:$0xff] }
 0x1b6   : > { %v491_v56 = vsel %vm489_vm5, %v488_v53, %v486_v52  ;;  %v490_v58 = vsel %vm489_vm5, %v486_v52, %v488_v53  ;;  %v1825_v53 = vld [vmem:[%s1632_s19 + $0x20] sm:$0xff]  ;;  %v1845_v61 = vld [vmem:[%s2045_s5 + $0x8] sm:$0xff] }
 0x1b7   : > { %v496_v59 = vmul.f32 %v1754_v47, %v491_v56  ;;  %1183 = vmatprep.subr.bf16.mxu1 %v1182_v54  ;;  %v495_v5 = vmul.f32 %v1764_v57, %v490_v58  ;;  %v1828_v54 = vld [vmem:[%s1632_s19 + $0x30] sm:$0xff] }
 0x1b8   : > { %1185 = vmatpush1.bf16.msra.mxu1 %v1184_v51  ;;  %v1821_v51 = vld [vmem:[%s1632_s19 + $0x38] sm:$0xff] }
 0x1b9   : > { %v498_v62 = vpop.permute.xlu1 %497  ;;  %1187 = vmatprep.subr.bf16.mxu1 %v1186_v60  ;;  %v500_v63 = vpop.permute.xlu0 %499  ;;  %v1190_v8 = vpack.c.bf16 %v496_v59, %v1681_v16  ;;  %v1192_v16 = vpack.c.bf16 %v495_v5, %v1674_v14  ;;  %v1198_v56 = vpack.c.bf16 %v1821_v51, %v1818_v50  ;;  %v1835_v59 = vld [vmem:[%s2045_s5] sm:$0xff]  ;;  %v1200_v60 = vpack.c.bf16 %v1828_v54, %v1825_v53 }
 0x1ba   : > { %v502_v12 = vsel %vm501_vm6, %v498_v62, %v500_v63  ;;  %v503_v13 = vsel %vm501_vm6, %v500_v63, %v498_v62 }
 0x1bb   : > { %v507_v23 = vmul.f32 %v1772_v7, %v502_v12  ;;  %v508_v24 = vmul.f32 %v1776_v11, %v503_v13 }
 0x1bc   : > { %1189 = vmatpush1.bf16.msra.mxu1 %v1188_v1 }
 0x1bd   : > { %v510_v18 = vpop.permute.xlu1 %509  ;;  %1191 = vmatprep.subr.bf16.mxu1 %v1190_v8  ;;  %v512_v19 = vpop.permute.xlu0 %511 }
 0x1be   : > { %v514_v20 = vsel %vm513_vm7, %v510_v18, %v512_v19  ;;  %v515_v22 = vsel %vm513_vm7, %v512_v19, %v510_v18 }
 0x1bf   : > { %v519_v25 = vmul.f32 %v1782_v15, %v514_v20  ;;  %v520_v28 = vmul.f32 %v1784_v17, %v515_v22 }
 0x1c0   : > { %1193 = vmatpush1.bf16.msra.mxu1 %v1192_v16 }
 0x1c1   : > { %v1196_v14 = vpack.c.bf16 %v519_v25, %v507_v23  ;;  %v522_v33 = vpop.permute.xlu1 %521  ;;  %v524_v34 = vpop.permute.xlu0 %523  ;;  %v1194_v35 = vpack.c.bf16 %v520_v28, %v508_v24 }
 0x1c2   : > { %v527_v36 = vsel %vm525_vm8, %v524_v34, %v522_v33  ;;  %v526_v39 = vsel %vm525_vm8, %v522_v33, %v524_v34 }
 0x1c3   : > { %v532_v40 = vmul.f32 %v1796_v29, %v527_v36  ;;  %1195 = vmatprep.subr.bf16.mxu1 %v1194_v35  ;;  %v531_v41 = vmul.f32 %v1800_v38, %v526_v39 }
 0x1c4   : > { %1197 = vmatpush1.bf16.msra.mxu1 %v1196_v14 }
 0x1c5   : > { %558 = vmatprep.subr.mxu1 %v532_v40 }
 0x1c8   : > { %559 = vmatpush1.msra.mxu1 %v531_v41 }
 0x1c9   : > { %1153 = vmatmul.mubr.msk.f32.vlgmr.msra.gmra.mrb[2].mxu1 %vm538_vm9, %v1809_v42 }
 0x1ca   : > { %1016 = vmatprep.mubr.f32.mxu1 %v1424_v0 }
 0x1d2   : > { %v1814_v43 = vpop.permute.xlu1 %535 }
 0x29c   : > { %v608_v45 = vpop.f32.mrb[2].mxu1 }
 0x29d   : > { %v609_v46 = vadd.f32 %v608_v45, %v1814_v43  ;;  %v610_v49 = vpop.f32.mrb[3].mxu1 }
 0x29e   : > { %v611_v52 = vadd.f32 %v610_v49, %v1814_v43 }
 0x29f   : > { %v613_v58 = vmax.f32 %v609_v46, 0.0 }
 0x2a0   : > { %v614_v55 = vmax.f32 %v611_v52, 0.0 }
 0x2a2   : > { %632 = vmatprep.subr.mxu0 %v614_v55 }
 0x2a3   : > { %633 = vmatpush1.msra.mxu0 %v613_v58 }
 0x2a4   : > { %1154 = vmatmul.mubr.msk.f32.vlgmr.msra.gmra.mrb[0].mxu0 %vm625_vm10, %v1835_v59  ;;  %1199 = vmatprep.subr.bf16.mxu0 %v1198_v56 }
 0x2a5   : > { %702 = vmatprep.mubr.f32.mxu0 %v1424_v0  ;;  %1201 = vmatpush1.bf16.msra.mxu0 %v1200_v60 }
 0x2a8   : > { %1155 = vmatmul.mubr.msk.f32.gmra.mrb[2].mxu0 %vm625_vm10, %v1845_v61 }
 0x2a9   : > { %790 = vmatprep.mubr.f32.mxu0 %v1424_v0 }
 0x2ac   : > { %1160 = vmatmul.mubr.msk.f32.vlgmr.msra.gmra.mrb[4].mxu0 %vm359_vm0, %v1666_v9  ;;  %v348_v9 = vld [vmem:[%s2046_s6] sm:$0xff] }
 0x2ad   : > { %943 = vmatprep.mubr.f32.mxu0 %v1424_v0 }
 0x377   : > { %v1853_v62 = vpop.f32.mrb[0].mxu0 }
 0x378   : > { %v1855_v63 = vpop.f32.mrb[1].mxu0 }
 0x37b   : > { %v1857_v1 = vpop.f32.mrb[2].mxu0 }
 0x37c   : > { %v1859_v5 = vpop.f32.mrb[3].mxu0 }
 0x37f   : > { %v792_v8 = vpop.f32.mrb[4].mxu0 }
 0x380   : > { %v793_v12 = vadd.f32 %v792_v8, %v1671_v10  ;;  %v794_v13 = vpop.f32.mrb[5].mxu0 }
 0x381   : > { %v795_v18 = vadd.f32 %v794_v13, %v1671_v10  ;;  %v349_v10 = vld [vmem:[%s2046_s6 + $0x8] sm:$0xff] }
 0x382   : > { %v1863_v19 = vmax.f32 %v793_v12, 0.0 }
 0x383   : > { %v1865_v16 = vmax.f32 %v795_v18, 0.0 }
 0x384   : > { %799 = vrot.lane.b32.xlu0 %v1863_v19, %s1427_s22 }
 0x385   : > { %801 = vrot.lane.b32.xlu1 %v1865_v16, %s1427_s22  ;;  %s1352_s22 = sshll.u32 %s1434_s13, 4  ;;  %s1353_s22 = int_to_ptr.vmem [resolvable:$false] %s1352_s22 }
 0x388   : > { %809 = vrot.lane.b32.xlu0 %v1863_v19, %s1426_s18 }
 0x389   : > { %811 = vrot.lane.b32.xlu1 %v1865_v16, %s1426_s18 }
 0x38c   : > { %819 = vrot.lane.b32.xlu0 %v1863_v19, %s1428_s17 }
 0x38d   : > { %821 = vrot.lane.b32.xlu1 %v1865_v16, %s1428_s17  ;;  %s1354_s17 = scalar_lea.vmem %s1353_s22, 2048 }
 0x390   : > { %829 = vrot.lane.b32.xlu0 %v1863_v19, %s1429_s25 }
 0x391   : > { %831 = vrot.lane.b32.xlu1 %v1865_v16, %s1429_s25 }
 0x394   : > { %839 = vrot.lane.b32.xlu0 %v1863_v19, %s1430_s10 }
 0x395   : > { %841 = vrot.lane.b32.xlu1 %v1865_v16, %s1430_s10 }
 0x398   : > { %849 = vrot.lane.b32.xlu0 %v1863_v19, %s1431_s14 }
 0x399   : > { %851 = vrot.lane.b32.xlu1 %v1865_v16, %s1431_s14  ;;  %s1967_s14 = scalar_lea.vmem [#allocation7], %s1149_s15  ;;  %s1177_s15 = sshll.u32 %s1502_s9, 10 }
 0x39a   : > { %s1991_s21 = scalar_lea.hbm %s2048_s8, %s1177_s15  ;;  %s1043_s9 = scalar_lea.sflag [#allocation4], %s1626_s26 }
 0x39c   : > { %859 = vrot.lane.b32.xlu0 %v1863_v19, %s1432_s16 }
 0x39d   : > { %861 = vrot.lane.b32.xlu1 %v1865_v16, %s1432_s16  ;;  %s1057_s16 = sshll.u32 %s1967_s14, 4  ;;  %s1993_s16 = int_to_ptr.vmem [resolvable:$true] %s1057_s16 }
 0x39e   : > { %s1348_s19 = scalar_lea.vmem %s1993_s16, 1024  ;;  %p1355_p10 = scmp.lt.s32.totalorder %s1993_s16, %s1353_s22 }
 0x39f   : > { %p1349_p4 = scmp.ne.s32.totalorder %s1993_s16, %s1348_s19  ;;  %p1356_p13 = scmp.lt.s32.totalorder %s1354_s17, %s1348_s19 }
 0x3a0   : > { %869 = vrot.lane.b32.xlu0 %v1863_v19, %s1433_s11 }
 0x3a1   : > { %871 = vrot.lane.b32.xlu1 %v1865_v16, %s1433_s11  ;;  %p1350_p6 = pnand %p1349_p4, %p1575_p12  ;;  %p1357_p3 = por %p1356_p13, %p1355_p10 }
 0x3a3   : > { %p1351_p8 = pneg %p1350_p6 }
 0x3a4   : > { %617 = vperm.xlu0 %1288, %v348_v9  }
 0x3a5   : > { %622 = vperm.xlu1 %1289, %v349_v10   ;;  %p1358_p7 = pnand %p1357_p3, %p1351_p8 }
 0x3f6   : > { %v800_v20 = vpop.permute.xlu0 %799 }
 0x3f7   : > { %v802_v22 = vpop.permute.xlu1 %801 }
 0x3f8   : > { %v803_v23 = vsel %vm442_vm3, %v800_v20, %v802_v22  ;;  %v804_v24 = vsel %vm442_vm3, %v802_v22, %v800_v20 }
 0x3f9   : > { %v807_v34 = vmul.f32 %v804_v24, %v1728_v30  ;;  %v808_v35 = vmul.f32 %v803_v23, %v1730_v31 }
 0x3fa   : > { %v810_v25 = vpop.permute.xlu0 %809 }
 0x3fb   : > { %v812_v28 = vpop.permute.xlu1 %811 }
 0x3fc   : > { %v813_v14 = vsel %vm453_vm1, %v810_v25, %v812_v28  ;;  %v814_v33 = vsel %vm453_vm1, %v812_v28, %v810_v25 }
 0x3fd   : > { %v817_v36 = vmul.f32 %v814_v33, %v1717_v26  ;;  %v818_v39 = vmul.f32 %v813_v14, %v1719_v27 }
 0x3fe   : > { %v820_v40 = vpop.permute.xlu0 %819 }
 0x3ff   : > { %v1204_v41 = vpack.c.bf16 %v817_v36, %v807_v34  ;;  %v822_v45 = vpop.permute.xlu1 %821  ;;  %v1202_v46 = vpack.c.bf16 %v818_v39, %v808_v35 }
 0x400   : > { %v823_v49 = vsel %vm465_vm2, %v820_v40, %v822_v45  ;;  %v824_v52 = vsel %vm465_vm2, %v822_v45, %v820_v40 }
 0x401   : > { %1203 = vmatprep.subr.bf16.mxu0 %v1202_v46  ;;  %v827_v27 = vmul.f32 %v824_v52, %v1756_v48  ;;  %v828_v56 = vmul.f32 %v823_v49, %v1737_v37 }
 0x402   : > { %1205 = vmatpush1.bf16.msra.mxu0 %v1204_v41  ;;  %v830_v55 = vpop.permute.xlu0 %829 }
 0x403   : > { %v832_v30 = vpop.permute.xlu1 %831 }
 0x404   : > { %v833_v31 = vsel %vm477_vm4, %v830_v55, %v832_v30  ;;  %v834_v26 = vsel %vm477_vm4, %v832_v30, %v830_v55 }
 0x405   : > { %v837_v58 = vmul.f32 %v834_v26, %v1749_v44  ;;  %v838_v60 = vmul.f32 %v833_v31, %v1732_v32 }
 0x406   : > { %v840_v8 = vpop.permute.xlu0 %839 }
 0x407   : > { %v1208_v12 = vpack.c.bf16 %v837_v58, %v827_v27  ;;  %v842_v13 = vpop.permute.xlu1 %841  ;;  %v1206_v18 = vpack.c.bf16 %v838_v60, %v828_v56 }
 0x408   : > { %v843_v9 = vsel %vm489_vm5, %v840_v8, %v842_v13  ;;  %v844_v10 = vsel %vm489_vm5, %v842_v13, %v840_v8 }
 0x409   : > { %v847_v20 = vmul.f32 %v843_v9, %v1764_v57  ;;  %v848_v48 = vmul.f32 %v844_v10, %v1754_v47  ;;  %1207 = vmatprep.subr.bf16.mxu0 %v1206_v18 }
 0x40a   : > { %1209 = vmatpush1.bf16.msra.mxu0 %v1208_v12  ;;  %v850_v37 = vpop.permute.xlu0 %849 }
 0x40b   : > { %v1212_v44 = vpack.c.bf16 %v847_v20, %v1863_v19  ;;  %v852_v32 = vpop.permute.xlu1 %851  ;;  %v1210_v22 = vpack.c.bf16 %v848_v48, %v1865_v16 }
 0x40c   : > { %v853_v23 = vsel %vm501_vm6, %v850_v37, %v852_v32  ;;  %v854_v24 = vsel %vm501_vm6, %v852_v32, %v850_v37 }
 0x40d   : > { %1211 = vmatprep.subr.bf16.mxu0 %v1210_v22  ;;  %v857_v19 = vmul.f32 %v853_v23, %v1772_v7  ;;  %v858_v16 = vmul.f32 %v854_v24, %v1776_v11 }
 0x40e   : > { %1213 = vmatpush1.bf16.msra.mxu0 %v1212_v44  ;;  %v860_v25 = vpop.permute.xlu0 %859 }
 0x40f   : > { %v862_v57 = vpop.permute.xlu1 %861 }
 0x410   : > { %v863_v47 = vsel %vm513_vm7, %v860_v25, %v862_v57  ;;  %v864_v28 = vsel %vm513_vm7, %v862_v57, %v860_v25 }
 0x411   : > { %v867_v14 = vmul.f32 %v863_v47, %v1782_v15  ;;  %v868_v33 = vmul.f32 %v864_v28, %v1784_v17 }
 0x412   : > { %v870_v34 = vpop.permute.xlu0 %869 }
 0x413   : > { %v1216_v35 = vpack.c.bf16 %v867_v14, %v857_v19  ;;  %v872_v36 = vpop.permute.xlu1 %871  ;;  %v1214_v39 = vpack.c.bf16 %v868_v33, %v858_v16 }
 0x414   : > { %v874_v40 = vsel %vm525_vm8, %v872_v36, %v870_v34  ;;  %v873_v41 = vsel %vm525_vm8, %v870_v34, %v872_v36 }
 0x415   : > { %v878_v45 = vmul.f32 %v874_v40, %v1796_v29  ;;  %1215 = vmatprep.subr.bf16.mxu0 %v1214_v39  ;;  %v877_v7 = vmul.f32 %v873_v41, %v1800_v38 }
 0x416   : > { %1217 = vmatpush1.bf16.msra.mxu0 %v1216_v35 }
 0x417   : > { %895 = vmatprep.subr.mxu0 %v878_v45 }
 0x41a   : > { %896 = vmatpush1.msra.mxu0 %v877_v7 }
 0x41b   : > { %1161 = vmatmul.mubr.msk.f32.vlgmr.msra.gmra.mrb[6].mxu0 %vm538_vm9, %v1809_v42 }
 0x423   : > { %v618_v11 = vpop.permute.xlu0 %617 }
 0x424   : > { %v699_v15 = vadd.f32 %v1853_v62, %v618_v11  ;;  %v701_v17 = vadd.f32 %v1855_v63, %v618_v11  ;;  %v623_v46 = vpop.permute.xlu1 %622 }
 0x425   : > { %v705_v21 = vadd.f32 %v1857_v1, %v623_v46  ;;  %v707_v29 = vadd.f32 %v1859_v5, %v623_v46 }
 0x426   : > { %v709_v49 = vadd.f32 %v699_v15, %v1651_v4  ;;  %v710_v52 = vadd.f32 %v701_v17, %v1645_v2 }
 0x427   : > { %v711_v38 = vadd.f32 %v705_v21, %v1656_v6  ;;  %v712_v55 = vadd.f32 %v707_v29, %v1648_v3 }
 0x428   : > { %v713_v30 = vmax.f32 %v709_v49, 0.0  ;;  %v714_v42 = vmax.f32 %v710_v52, 0.0 }
 0x429   : > { %v715_v31 = vmax.f32 %v711_v38, 0.0  ;;  %v716_v26 = vmax.f32 %v712_v55, 0.0 }
 0x42a   : > { %717 = vst [vmem:[%s1967_s14] sm:$0xff] %v713_v30  ;;  %718 = vst [vmem:[%s1967_s14 + $0x8] sm:$0xff] %v714_v42 }
 0x42b   : > { %719 = vst [vmem:[%s1967_s14 + $0x10] sm:$0xff] %v715_v31  ;;  %720 = vst [vmem:[%s1967_s14 + $0x18] sm:$0xff] %v716_v26 }
 0x4ee   : > { %v945_v2 = vpop.f32.mrb[6].mxu0 }
 0x4ef   : > { %v946_v4 = vadd.f32 %v945_v2, %v1814_v43  ;;  %v947_v6 = vpop.f32.mrb[7].mxu0 }
 0x4f0   : > { %v948_v3 = vadd.f32 %v947_v6, %v1814_v43 }
 0x4f1   : > { %v950_v63 = vmax.f32 %v946_v4, 0.0 }
 0x4f2   : > { %v951_v62 = vmax.f32 %v948_v3, 0.0 }
 0x4f4   : > { %952 = vmatprep.subr.mxu1 %v951_v62 }
 0x4f5   : > { %953 = vmatpush1.msra.mxu1 %v950_v63 }
 0x4f6   : > { %1162 = vmatmul.mubr.msk.f32.vlgmr.msra.gmra.mrb[4].mxu1 %vm625_vm10, %v1835_v59 }
 0x4f7   : > { %1022 = vmatprep.mubr.f32.mxu1 %v1424_v0 }
 0x4fa   : > { %1163 = vmatmul.mubr.msk.f32.gmra.mrb[6].mxu1 %vm625_vm10, %v1845_v61 }
 0x5c9   : > { %v1018_v1 = vpop.f32.mrb[4].mxu1 }
 0x5ca   : > { %v1019_v5 = vadd.f32 %v1018_v1, %v618_v11  ;;  %v1020_v27 = vpop.f32.mrb[5].mxu1 }
 0x5cb   : > { %v1021_v43 = vadd.f32 %v1020_v27, %v618_v11 }
 0x5cc   : > { %v1029_v56 = vadd.f32 %v1825_v53, %v1019_v5 }
 0x5cd   : > { %v1030_v58 = vadd.f32 %v1818_v50, %v1021_v43  ;;  %v1024_v60 = vpop.f32.mrb[6].mxu1 }
 0x5ce   : > { %v1033_v8 = vmax.f32 %v1029_v56, 0.0  ;;  %v1025_v59 = vadd.f32 %v1024_v60, %v623_v46  ;;  %v1026_v0 = vpop.f32.mrb[7].mxu1 }
 0x5cf   : > { %v1034_v12 = vmax.f32 %v1030_v58, 0.0  ;;  %v1027_v13 = vadd.f32 %v1026_v0, %v623_v46 }
 0x5d0   : > { %1164 = vst [vmem:[%s1967_s14 + $0x20] sm:$0xff] %v1033_v8  ;;  %v1031_v61 = vadd.f32 %v1828_v54, %v1025_v59 }
 0x5d1   : > { %1165 = vst [vmem:[%s1967_s14 + $0x28] sm:$0xff] %v1034_v12  ;;  %v1032_v53 = vadd.f32 %v1821_v51, %v1027_v13 }
 0x5d2   : > { %v1035_v18 = vmax.f32 %v1031_v61, 0.0 }
 0x5d3   : > { %v1036_v50 = vmax.f32 %v1032_v53, 0.0 }
 0x5d4   : > { %1166 = vst [vmem:[%s1967_s14 + $0x30] sm:$0xff] %v1035_v18 }
 0x5d5   : > { %1167 = vst [vmem:[%s1967_s14 + $0x38] sm:$0xff] %v1036_v50 }
 0x5d6   : > { %1361 = shalt.err (!%p1358_p7)
}
 0x5d7   : > { %s1362_s25 = scalar_lea.hbm %s1991_s21, 1024  ;;  %s1366_s15 = scalar_lea.hbm %s2048_s8, 2048 }
 0x5d8   : > { %p1363_p9 = scmp.ne.s32.totalorder %s1991_s21, %s1362_s25  ;;  %p1367_p5 = scmp.lt.u32.totalorder %s1991_s21, %s2048_s8 }
 0x5d9   : > { %p1368_p11 = scmp.lt.u32.totalorder %s1366_s15, %s1362_s25  ;;  %p1370_p4 = scmp.lt.u32.totalorder %s1362_s25, %s1991_s21 }
 0x5da   : > { %p1364_p1 = pnand %p1363_p9, %p1575_p12 }
 0x5db   : > { %p1369_p2 = por %p1368_p11, %p1367_p5 }
 0x5dc   : > { %p1365_p0 = pneg %p1364_p1 }
 0x5dd   : > { %p1371_p6 = por %p1370_p4, %p1369_p2 }
 0x5df   : > { %p1372_p8 = pnand %p1371_p6, %p1365_p0 }
 0x5e1   : > { %1375 = shalt.err (!%p1372_p8)
}
 0x5e2   : > { %s1435_s19 = smov 256  }
 0x5e3   : > { %1224 = dma.vmem_to_hbm [thread:$0]  (%p1575_p12), %s1993_s16, 1024, %s1991_s21, %s1043_s9, %s1435_s19, %s1435_s19, %s1426_s18  }
 0x5e4 PF: > { %s1072_s13 = sand.u32 1, %s1406_s27   ;;  %p2068_p10 = scmp.ne.s32.totalorder %s2056_s12, 0 }
 0x5e5   : > { %p2069_p13 = scmp.ge.s32.totalorder %s1418_s30, 2  ;;  %s1073_s22 = scalar_lea.sflag [#allocation4], %s1072_s13 }
 0x5e7   : > { %p1235_p3 = pnand %p2069_p13, %p2068_p10 }
 0x5e9   : > { %1401 = dma.done.wait (!%p1235_p3), %s1073_s22, 1024  }
 0x5ea   : > { %1403 = vsyncadd (!%p1235_p3), %s1073_s22, 4294966272  ;;  %s2070_s30 = sld [smem:[#allocation11_spill]]  ;;  %s2071_s27 = smov %s1410_s28 }
 0x5eb   : > { %s2072_s28 = smov %s1414_s29  ;;  %s2073_s29 = smov %s1571_s23 }
 0x5f0   : > { %p22_p7 = scmp.ge.s32.totalorder %s2070_s30, 4  }
 0x5f2   :  { %24 = sbr.rel (!%p22_p7) target bundleno = 6 (0x6), region = 110 }
 0x5f9   :  { %1078 = vsyncpa [#allocation3], 1 }
 0x5fa   :  { %1080 = vsyncpa [#allocation3 + $0x1], 1 }
 0x5fb   :  { %1081 = vsyncpa [#allocation6], 1 }
 0x5fc   :  { %1082 = vsyncpa [#allocation4], 1 }
 0x5fd   :  { %1084 = vsyncpa [#allocation4 + $0x1], 1 }

</bundles_post_ra>
